<compile_context>
chip_gen: v6e
topology: v6e:2x2x1
jax: 0.10.0
libtpu: 0.0.40
codegen_flags: <defaults>
</compile_context>

<pallas_src>
import jax
import jax.numpy as jnp
from jax.experimental import pallas as pl
from jax.experimental.pallas import tpu as pltpu

INPUT_SIZE = 100
HIDDEN_SIZE = 100
OUTPUT_SIZE = 3  # len(selected_classes)

# Lane-dense padded sizes (multiples of 128).
IN_P = 128
HID_P = 128
OUT_P = 128

# Row tile for large batches.  2 bufs x (x + y tiles, f32) + resident bf16
# weights is well under the 32 MiB default scoped VMEM even on v7x (64 MiB
# physical), so the same tile is safe on v5e/v6e/v7x.
TILE_B = 512


def _two_layer_kernel(x_ref, w1_ref, b1_ref, w2_ref, b2_ref, o_ref):
    # Hoist the bias loads/broadcasts once per invocation (JAX does not CSE
    # broadcast_in_dim, so this stays cheap even if the body is ever looped).
    b1 = b1_ref[...]  # (1, HID_P) f32
    b2 = b2_ref[...]  # (1, OUT_P) f32

    # fc1: bf16 MXU inputs, f32 accumulation; bias added in f32.
    x = x_ref[...].astype(jnp.bfloat16)
    h = jnp.dot(x, w1_ref[...], preferred_element_type=jnp.float32) + b1
    # ReLU (padded hidden columns are exactly 0 and stay 0).
    h = jnp.maximum(h, 0.0)
    # fc2
    y = jnp.dot(h.astype(jnp.bfloat16), w2_ref[...],
                preferred_element_type=jnp.float32) + b2
    o_ref[...] = y.astype(o_ref.dtype)


def pad_params(w1, b1, w2, b2):
    """Zero-pad params to lane-dense 128-wide shapes; weights -> bf16."""
    w1p = (jnp.zeros((IN_P, HID_P), jnp.float32)
           .at[:INPUT_SIZE, :HIDDEN_SIZE].set(w1).astype(jnp.bfloat16))
    b1p = jnp.zeros((1, HID_P), jnp.float32).at[:, :HIDDEN_SIZE].set(b1)
    w2p = (jnp.zeros((HID_P, OUT_P), jnp.float32)
           .at[:HIDDEN_SIZE, :OUTPUT_SIZE].set(w2).astype(jnp.bfloat16))
    b2p = jnp.zeros((1, OUT_P), jnp.float32).at[:, :OUTPUT_SIZE].set(b2)
    return w1p, b1p, w2p, b2p


def two_layer_nn(x, w1p, b1p, w2p, b2p):
    """Fused forward: relu(x @ w1 + b1) @ w2 + b2.

    x: (B, INPUT_SIZE) f32; padded params from pad_params().
    Returns (B, OUTPUT_SIZE) f32.
    """
    B = x.shape[0]
    # Zero-pad activations to the padded lane width (extra K columns are 0,
    # so they contribute nothing to the contraction).
    xp = jnp.zeros((B, IN_P), jnp.float32).at[:, :INPUT_SIZE].set(x)

    cost = pl.CostEstimate(
        flops=2 * B * (IN_P * HID_P + HID_P * OUT_P),
        transcendentals=0,
        bytes_accessed=(xp.size * 4 + w1p.size * 2 + w2p.size * 2
                        + b1p.size * 4 + b2p.size * 4 + B * OUT_P * 4),
    )

    if B <= TILE_B:
        # Tiny batch: one full-array VMEM block per operand, no grid, no
        # software-pipeline setup overhead.
        out = pl.pallas_call(
            _two_layer_kernel,
            out_shape=jax.ShapeDtypeStruct((B, OUT_P), jnp.float32),
            in_specs=[pl.BlockSpec(memory_space=pltpu.MemorySpace.VMEM)] * 5,
            out_specs=pl.BlockSpec(memory_space=pltpu.MemorySpace.VMEM),
            cost_estimate=cost,
        )(xp, w1p, b1p, w2p, b2p)
    else:
        # Large batch: stream x/y in TILE_B row blocks; weights/biases stay
        # resident in VMEM across the loop. Batch axis is "parallel" so v7x
        # shards it across both TensorCores (harmless on v5e/v6e).
        nb = pl.cdiv(B, TILE_B)
        Bp = nb * TILE_B
        if Bp != B:
            xp = jnp.zeros((Bp, IN_P), jnp.float32).at[:B].set(xp)
        out = pl.pallas_call(
            _two_layer_kernel,
            out_shape=jax.ShapeDtypeStruct((Bp, OUT_P), jnp.float32),
            grid=(nb,),
            in_specs=[
                pl.BlockSpec((TILE_B, IN_P), lambda i: (i, 0)),
                pl.BlockSpec((IN_P, HID_P), lambda i: (0, 0)),
                pl.BlockSpec((1, HID_P), lambda i: (0, 0)),
                pl.BlockSpec((HID_P, OUT_P), lambda i: (0, 0)),
                pl.BlockSpec((1, OUT_P), lambda i: (0, 0)),
            ],
            out_specs=pl.BlockSpec((TILE_B, OUT_P), lambda i: (i, 0)),
            compiler_params=pltpu.CompilerParams(
                dimension_semantics=("parallel",)),
            cost_estimate=cost,
        )(xp, w1p, b1p, w2p, b2p)
        out = out[:B]

    # Drop the zero padding columns -> (B, OUTPUT_SIZE).
    return out[:, :OUTPUT_SIZE]


def init_params(key):
    """Deterministic PyTorch-style (Kaiming-uniform-ish) init, f32."""
    k1, k2, k3, k4 = jax.random.split(key, 4)
    bound1 = 1.0 / jnp.sqrt(INPUT_SIZE)
    bound2 = 1.0 / jnp.sqrt(HIDDEN_SIZE)
    # Stored as (in, out) == transpose of PyTorch's (out, in) weight layout.
    w1 = jax.random.uniform(k1, (INPUT_SIZE, HIDDEN_SIZE), jnp.float32,
                            -bound1, bound1)
    b1 = jax.random.uniform(k2, (1, HIDDEN_SIZE), jnp.float32, -bound1, bound1)
    w2 = jax.random.uniform(k3, (HIDDEN_SIZE, OUTPUT_SIZE), jnp.float32,
                            -bound2, bound2)
    b2 = jax.random.uniform(k4, (1, OUTPUT_SIZE), jnp.float32, -bound2, bound2)
    return w1, b1, w2, b2


if __name__ == "__main__":
    key = jax.random.PRNGKey(0)
    kx, kp = jax.random.split(key)

    B = 8  # small batch
    x = jax.random.normal(kx, (B, INPUT_SIZE), dtype=jnp.float32)
    w1, b1, w2, b2 = init_params(kp)
    w1p, b1p, w2p, b2p = pad_params(w1, b1, w2, b2)

    out = two_layer_nn(x, w1p, b1p, w2p, b2p)
    out = jax.block_until_ready(out)
    assert out.shape == (B, OUTPUT_SIZE)

    # Tight check: same padded bf16 weights, plain JAX (same math as kernel).
    xp = jnp.zeros((B, IN_P), jnp.float32).at[:, :INPUT_SIZE].set(x)
    h = jnp.dot(xp.astype(jnp.bfloat16), w1p,
                preferred_element_type=jnp.float32) + b1p
    h = jnp.maximum(h, 0.0)
    ref_bf16 = (jnp.dot(h.astype(jnp.bfloat16), w2p,
                        preferred_element_type=jnp.float32)
                + b2p)[:, :OUTPUT_SIZE]
    assert jnp.allclose(out, ref_bf16, atol=1e-3, rtol=1e-3)

    # Semantic check against the original full-f32 forward pass (loose
    # tolerance accounts for bf16 weight/activation rounding).
    ref_f32 = jnp.maximum(x @ w1 + b1, 0.0) @ w2 + b2
    assert jnp.allclose(out, ref_f32, atol=5e-2, rtol=5e-2)

    print("KERNEL_OK")
</pallas_src>

<mosaic_0001>
module attributes {stable_mosaic.version = 11 : i64} {
  func.func @_two_layer_kernel(%arg0: memref<8x128xf32, #tpu.memory_space<vmem>>, %arg1: memref<128x128xbf16, #tpu.memory_space<vmem>>, %arg2: memref<1x128xf32, #tpu.memory_space<vmem>>, %arg3: memref<128x128xbf16, #tpu.memory_space<vmem>>, %arg4: memref<1x128xf32, #tpu.memory_space<vmem>>, %arg5: memref<8x128xf32, #tpu.memory_space<vmem>>) attributes {dimension_semantics = [], scalar_prefetch = 0 : i64, scratch_operands = 0 : i64, tpu.core_type = #tpu.core_type<tc>} {
    %c0 = arith.constant 0 : index
    %c0_0 = arith.constant 0 : index
    %0 = vector.load %arg2[%c0, %c0_0] : memref<1x128xf32, #tpu.memory_space<vmem>>, vector<1x128xf32>
    %c0_1 = arith.constant 0 : index
    %c0_2 = arith.constant 0 : index
    %1 = vector.load %arg4[%c0_1, %c0_2] : memref<1x128xf32, #tpu.memory_space<vmem>>, vector<1x128xf32>
    %c0_3 = arith.constant 0 : index
    %c0_4 = arith.constant 0 : index
    %2 = vector.load %arg0[%c0_3, %c0_4] : memref<8x128xf32, #tpu.memory_space<vmem>>, vector<8x128xf32>
    %3 = arith.truncf %2 : vector<8x128xf32> to vector<8x128xbf16>
    %c0_5 = arith.constant 0 : index
    %c0_6 = arith.constant 0 : index
    %4 = vector.load %arg1[%c0_5, %c0_6] : memref<128x128xbf16, #tpu.memory_space<vmem>>, vector<128x128xbf16>
    %cst = arith.constant dense<0.000000e+00> : vector<8x128xf32>
    %5 = tpu.matmul %3, %4, %cst {dimension_numbers = #tpu.dot_dimension_numbers<[1], [0], [0], [1], [0, 0, 1, 1], [], []>} : vector<8x128xbf16>, vector<128x128xbf16>, vector<8x128xf32> -> vector<8x128xf32>
    %6 = vector.broadcast %0 : vector<1x128xf32> to vector<8x128xf32>
    %7 = arith.addf %5, %6 : vector<8x128xf32>
    %cst_7 = arith.constant 0.000000e+00 : f32
    %8 = vector.broadcast %cst_7 : f32 to vector<8x128xf32>
    %9 = arith.maximumf %7, %8 : vector<8x128xf32>
    %10 = arith.truncf %9 : vector<8x128xf32> to vector<8x128xbf16>
    %c0_8 = arith.constant 0 : index
    %c0_9 = arith.constant 0 : index
    %11 = vector.load %arg3[%c0_8, %c0_9] : memref<128x128xbf16, #tpu.memory_space<vmem>>, vector<128x128xbf16>
    %cst_10 = arith.constant dense<0.000000e+00> : vector<8x128xf32>
    %12 = tpu.matmul %10, %11, %cst_10 {dimension_numbers = #tpu.dot_dimension_numbers<[1], [0], [0], [1], [0, 0, 1, 1], [], []>} : vector<8x128xbf16>, vector<128x128xbf16>, vector<8x128xf32> -> vector<8x128xf32>
    %13 = vector.broadcast %1 : vector<1x128xf32> to vector<8x128xf32>
    %14 = arith.addf %12, %13 : vector<8x128xf32>
    %c0_11 = arith.constant 0 : index
    %c0_12 = arith.constant 0 : index
    %15 = vector.load %arg5[%c0_11, %c0_12] : memref<8x128xf32, #tpu.memory_space<vmem>>, vector<8x128xf32>
    tpu.vector_store %arg5[%c0_11, %c0_12], %14 {strides = array<i32>} : memref<8x128xf32, #tpu.memory_space<vmem>>, vector<8x128xf32>,
    return
  }
}

</mosaic_0001>

<bundles_post_ra>
// kernel: tpu_custom_call.1
= control target key start
LH: loop header
LB: loop body
LE: loop exit
PB: predicated region body
PF: predicated region fallthrough
CT: control target
= control target key end

     0   :  { %10 = vsyncpa [#allocation3], 0  ;;  %s546_s0 = inlined_call_operand.hbm [shape: f32[8,128], index: 0, kind: input, shape index: {}]   ;;  %s547_s1 = inlined_call_operand.hbm [shape: bf16[128,128], index: 1, kind: input, shape index: {}]   ;;  %s548_s2 = inlined_call_operand.vmem [shape: f32[1,128], index: 2, kind: input, shape index: {}]   ;;  %s549_s3 = inlined_call_operand.hbm [shape: bf16[128,128], index: 3, kind: input, shape index: {}]   ;;  %s550_s4 = inlined_call_operand.vmem [shape: f32[1,128], index: 4, kind: input, shape index: {}]   ;;  %s551_s5 = inlined_call_operand.hbm [shape: f32[8,128], index: 5, kind: output, shape index: {}]  }
   0x1   :  { %11 = vsyncpa [#allocation6], 0 }
   0x2   :  { %12 = vsyncpa [#allocation4], 0  ;;  %s490_s18 = smov [#allocation5]  }
   0x3   :  { %s28_s19 = sshll.u32 %s490_s18, 4  ;;  %s29_s19 = int_to_ptr.vmem [resolvable:$true] %s28_s19 }
   0x4   :  { %s412_s20 = scalar_lea.vmem %s29_s19, 1024  ;;  %p417_p1 = scmp.lt.s32.totalorder %s29_s19, %s29_s19 }
   0x5   :  { %p413_p0 = scmp.ne.s32.totalorder %s29_s19, %s412_s20  ;;  %p418_p2 = scmp.lt.s32.totalorder %s412_s20, %s412_s20 }
   0x7   :  { %p419_p3 = por %p418_p2, %p417_p1 }
   0x9   :  { %p420_p4 = pnand %p419_p3, %p413_p0 }
   0xb   :  { %423 = shalt.err (!%p420_p4)
}
   0xc   :  { %s491_s21 = smov 64   ;;  %s492_s22 = smov 4  }
   0xd   :  { %34 = dma.hbm_to_vmem [thread:$0]  %s547_s1, 1024, %s29_s19, [#allocation6], %s491_s21, %s491_s21, %s492_s22  }
   0xe   :  { %s493_s25 = smov [#allocation2]   ;;  %s494_s27 = smov [#allocation7]  }
   0xf   :  { %s19_s26 = sshll.u32 %s493_s25, 4  ;;  %s42_s28 = sshll.u32 %s494_s27, 4  ;;  %s20_s26 = int_to_ptr.vmem [resolvable:$true] %s19_s26  ;;  %s43_s28 = int_to_ptr.vmem [resolvable:$true] %s42_s28 }
  0x10   :  { %s432_s29 = scalar_lea.vmem %s20_s26, 128  ;;  %p437_p6 = scmp.lt.s32.totalorder %s20_s26, %s20_s26 }
  0x11   :  { %p433_p5 = scmp.ne.s32.totalorder %s20_s26, %s432_s29  ;;  %p438_p7 = scmp.lt.s32.totalorder %s432_s29, %s432_s29 }
  0x13   :  { %p439_p8 = por %p438_p7, %p437_p6 }
  0x15   :  { %p440_p9 = pnand %p439_p8, %p433_p5 }
  0x17   :  { %443 = shalt.err (!%p440_p9)
}
  0x18   :  { %22 = dma.hbm_to_vmem [thread:$0]  %s546_s0, 128, %s20_s26, [#allocation3]  }
  0x19   :  { %s452_s7 = scalar_lea.vmem %s43_s28, 1024  ;;  %p457_p11 = scmp.lt.s32.totalorder %s43_s28, %s43_s28 }
  0x1a   :  { %p453_p10 = scmp.ne.s32.totalorder %s43_s28, %s452_s7  ;;  %p458_p12 = scmp.lt.s32.totalorder %s452_s7, %s452_s7 }
  0x1c   :  { %p459_p13 = por %p458_p12, %p457_p11 }
  0x1e   :  { %p460_p0 = pnand %p459_p13, %p453_p10 }
  0x20   :  { %463 = shalt.err (!%p460_p0)
}
  0x21   :  { %48 = dma.hbm_to_vmem [thread:$0]  %s549_s3, 1024, %s43_s28, [#allocation6], %s491_s21, %s491_s21, %s492_s22  }
  0x22   :  { %484 = dma.done.wait [#allocation3], 128  }
  0x23   :  { %485 = vsyncadd [#allocation3], 4294967168 }
  0x24   :  { %486 = dma.done.wait [#allocation6], 2048  }
  0x25   :  { %487 = vsyncadd [#allocation6], 4294965248  ;;  %v495_v0 = vmov 0.0   ;;  %vm496_vm0 = vmmov 0   ;;  %v388_v1 = vld [vmem:[#allocation5 + $0x38] sm:$0xff]   ;;  %v389_v2 = vld [vmem:[#allocation5 + $0x30] sm:$0xff]  }
  0x26   :  { %340 = vmatprep.subr.bf16.mxu0 %v495_v0  ;;  %356 = vmatprep.mubr.msk.bf16.mxu0 %vm496_vm0, %v495_v0  ;;  %v390_v3 = vld [vmem:[#allocation5 + $0x28] sm:$0xff]   ;;  %v396_v4 = vld [vmem:[#allocation7 + $0x38] sm:$0xff]   ;;  %v391_v5 = vld [vmem:[#allocation5 + $0x20] sm:$0xff]   ;;  %s497_s11 = smov [#allocation8]  }
  0x27   :  { %360 = vmatprep.subr.bf16.mxu1 %v495_v0  ;;  %376 = vmatprep.mubr.msk.bf16.mxu1 %vm496_vm0, %v495_v0  ;;  %v397_v6 = vld [vmem:[#allocation7 + $0x30] sm:$0xff]   ;;  %v392_v7 = vld [vmem:[#allocation5 + $0x18] sm:$0xff]   ;;  %v398_v8 = vld [vmem:[#allocation7 + $0x28] sm:$0xff]   ;;  %s294_s12 = sshll.u32 %s497_s11, 4  ;;  %s295_s12 = int_to_ptr.vmem [resolvable:$true] %s294_s12 }
  0x28   :  { %341 = vmatpush3.bf16.msra.mxu0 %v388_v1  ;;  %361 = vmatpush3.bf16.msra.mxu1 %v396_v4  ;;  %v393_v9 = vld [vmem:[#allocation5 + $0x10] sm:$0xff]   ;;  %v399_v10 = vld [vmem:[#allocation7 + $0x20] sm:$0xff]   ;;  %v394_v11 = vld [vmem:[#allocation5 + $0x8] sm:$0xff]   ;;  %p469_p2 = scmp.lt.s32.totalorder %s295_s12, %s295_s12 }
  0x29   :  { %342 = vmatprep.subr.bf16.mxu0 %v495_v0  ;;  %362 = vmatprep.subr.bf16.mxu1 %v495_v0  ;;  %v400_v12 = vld [vmem:[#allocation7 + $0x18] sm:$0xff]   ;;  %v395_v13 = vld [vmem:[#allocation5] sm:$0xff]   ;;  %v401_v15 = vld [vmem:[#allocation7 + $0x10] sm:$0xff]  }
  0x2a   :  { %v63_v14 = vld [vmem:[#allocation2] sm:$0xff]  ;;  %v402_v17 = vld [vmem:[#allocation7 + $0x8] sm:$0xff]   ;;  %v403_v18 = vld [vmem:[#allocation7] sm:$0xff]  }
  0x2b   :  { %v64_v16 = vpack.c.bf16 %v63_v14, %v63_v14  ;;  %v304_v19 = vld [vmem:[%s548_s2] ss:$0 sm:$0xff]  ;;  %s464_s2 = scalar_lea.vmem %s295_s12, 128 }
  0x2c   :  { %343 = vmatpush3.bf16.msra.mxu0 %v389_v2  ;;  %363 = vmatpush3.bf16.msra.mxu1 %v397_v6  ;;  %v313_v27 = vld [vmem:[%s550_s4] ss:$0 sm:$0xff]  ;;  %p465_p1 = scmp.ne.s32.totalorder %s295_s12, %s464_s2  ;;  %p470_p3 = scmp.lt.s32.totalorder %s464_s2, %s464_s2 }
  0x2d   :  { %344 = vmatprep.subr.bf16.mxu0 %v495_v0  ;;  %364 = vmatprep.subr.bf16.mxu1 %v495_v0 }
  0x2e   :  { %p471_p4 = por %p470_p3, %p469_p2 }
  0x30   :  { %345 = vmatpush3.bf16.msra.mxu0 %v390_v3  ;;  %365 = vmatpush3.bf16.msra.mxu1 %v398_v8  ;;  %p472_p5 = pnand %p471_p4, %p465_p1 }
  0x31   :  { %346 = vmatprep.subr.bf16.mxu0 %v495_v0  ;;  %366 = vmatprep.subr.bf16.mxu1 %v495_v0 }
  0x34   :  { %347 = vmatpush3.bf16.msra.mxu0 %v391_v5  ;;  %367 = vmatpush3.bf16.msra.mxu1 %v399_v10 }
  0x35   :  { %348 = vmatprep.subr.bf16.mxu0 %v495_v0  ;;  %368 = vmatprep.subr.bf16.mxu1 %v495_v0 }
  0x38   :  { %349 = vmatpush3.bf16.msra.mxu0 %v392_v7  ;;  %369 = vmatpush3.bf16.msra.mxu1 %v400_v12 }
  0x39   :  { %350 = vmatprep.subr.bf16.mxu0 %v495_v0  ;;  %370 = vmatprep.subr.bf16.mxu1 %v495_v0 }
  0x3c   :  { %351 = vmatpush3.bf16.msra.mxu0 %v393_v9  ;;  %371 = vmatpush3.bf16.msra.mxu1 %v401_v15 }
  0x3d   :  { %352 = vmatprep.subr.bf16.mxu0 %v495_v0  ;;  %372 = vmatprep.subr.bf16.mxu1 %v495_v0 }
  0x40   :  { %353 = vmatpush3.bf16.msra.mxu0 %v394_v11  ;;  %373 = vmatpush3.bf16.msra.mxu1 %v402_v17 }
  0x41   :  { %354 = vmatprep.subr.bf16.mxu0 %v495_v0  ;;  %374 = vmatprep.subr.bf16.mxu1 %v495_v0 }
  0x44   :  { %355 = vmatpush3.bf16.msra.mxu0 %v395_v13  ;;  %375 = vmatpush3.bf16.msra.mxu1 %v403_v18 }
  0x47   :  { %357 = vmatmul.mubr.bf16.vlgmr.msra.gmra.mxu0 %v64_v16 }
 0x107   :  { %v169_v20 = vpop.f32.mrf.mxu0 }
 0x108   :  { %v170_v21 = vadd.f32 %v304_v19, %v169_v20 }
 0x109   :  { %v358_v22 = vpop.f32.mrf.mxu0 }
 0x10a   :  { %v175_v23 = vmax.f32 %v170_v21, 0.0 }
 0x10b   :  { %v172_v24 = vpop.f32.mrf.mxu0 }
 0x10c   :  { %v176_v25 = vpack.c.bf16 %v175_v23, %v175_v23 }
 0x10d   :  { %v359_v26 = vpop.f32.mrf.mxu0 }
 0x10e   :  { %377 = vmatmul.mubr.bf16.vlgmr.msra.gmra.mxu1 %v176_v25 }
 0x1ce   :  { %v281_v28 = vpop.f32.mrf.mxu1 }
 0x1cf   :  { %v282_v29 = vadd.f32 %v313_v27, %v281_v28 }
 0x1d0   :  { %v378_v30 = vpop.f32.mrf.mxu1 }
 0x1d1   :  { %287 = vst [vmem:[#allocation8] sm:$0xff] %v282_v29 }
 0x1d2   :  { %v284_v31 = vpop.f32.mrf.mxu1 }
 0x1d3   :  { %475 = shalt.err (!%p472_p5)
}
 0x1d4   :  { %297 = dma.vmem_to_hbm [thread:$0]  %s295_s12, 128, %s551_s5, [#allocation4]   ;;  %v379_v32 = vpop.f32.mrf.mxu1 }
 0x1d5   :  { %488 = dma.done.wait [#allocation4], 128  }
 0x1d6   :  { %489 = vsyncadd [#allocation4], 4294967168 }
 0x1d7   :  { %301 = vsyncpa [#allocation3], 1 }
 0x1d8   :  { %302 = vsyncpa [#allocation6], 1 }
 0x1d9   :  { %303 = vsyncpa [#allocation4], 1 }

</bundles_post_ra>
